<compile_context>
chip_gen: v6e
topology: v6e:2x2x1
jax: 0.10.0
libtpu: 0.0.40
codegen_flags: <defaults>
</compile_context>

<pallas_src>
import functools

import jax
import jax.numpy as jnp
from jax.experimental import pallas as pl
from jax.experimental.pallas import tpu as pltpu


def _additive_attn_kernel(keys_ref, q_ref, vals_ref, w1k_ref, w1q_ref, w2_ref,
                          out_ref, *, num_steps):
    T = num_steps
    BBT, _ = keys_ref.shape          # (BB*T, K)
    BB = BBT // T
    H = w1k_ref.shape[-1]

    k2 = keys_ref[...].astype(jnp.float32)     # (BB*T, K)
    q = q_ref[...].astype(jnp.float32)         # (BB, Q)
    v = vals_ref[...].astype(jnp.float32)      # (BB, T, V)
    w1k = w1k_ref[...].astype(jnp.float32)     # (K, H)   (already transposed)
    w1q = w1q_ref[...].astype(jnp.float32)     # (Q, H)   (already transposed)
    w2r = w2_ref[...].astype(jnp.float32)      # (1, H)

    # Folded key projection: one (BB*T, K) @ (K, H) MXU pass for the whole tile.
    kh = jnp.dot(k2, w1k, preferred_element_type=jnp.float32)        # (BB*T, H)
    # Query projection: (BB, Q) @ (Q, H).
    qh = jnp.dot(q, w1q, preferred_element_type=jnp.float32)         # (BB, H)

    # hidden = tanh([keys, q_broadcast] @ W1^T)  -> (BB, T, H)
    hidden = jnp.tanh(kh.reshape(BB, T, H) + qh[:, None, :])

    # scores = hidden @ W2^T, but done as a VPU multiply + XLU lane-reduce over H
    # (avoids a degenerate N=1 MXU matmul).
    scores = jnp.sum(hidden * w2r[None, :, :], axis=-1)               # (BB, T)

    # Softmax over T (num_steps).  valid_lens is None in the module's default path.
    m = jnp.max(scores, axis=-1, keepdims=True)                       # (BB, 1)
    e = jnp.exp(scores - m)                                           # (BB, T)
    denom = jnp.sum(e, axis=-1, keepdims=True)                        # (BB, 1)
    alpha = e * pl.reciprocal(denom, approx=True)                     # (BB, T)

    # bmm(alpha (1,T), values (T,V)) per batch row == sum_T alpha * values -> (BB, V)
    out = jnp.sum(alpha[:, :, None] * v, axis=1)                      # (BB, V)
    out_ref[...] = out.astype(out_ref.dtype)


def additive_attention(keys, values, queries, w1, w2, *, block_b=None):
    """
    keys:    (B, T, key_size)
    values:  (B, T, value_size)
    queries: (B, query_size)
    w1:      (num_hidden, key_size + query_size)   (nn.Linear weight, bias=False)
    w2:      (1, num_hidden)                        (nn.Linear weight, bias=False)
    returns: (B, value_size)
    """
    B, T, K = keys.shape
    V = values.shape[-1]
    Q = queries.shape[-1]
    H = w1.shape[0]

    # ---- choose batch tile BB (fold BB batch rows into one grid step) ----------
    if block_b is None:
        target_rows = 512                         # folded-M target: fills MXU rows,
        bb = max(1, target_rows // max(T, 1))     # amortizes ~600-cycle grid overhead
        if bb >= B:
            block_b = B                           # single grid step; blocks == full dims
        else:
            block_b = max(8, (bb // 8) * 8)       # keep non-final blocks (8,128)-friendly
            block_b = min(block_b, B)
    block_b = max(1, min(block_b, B))

    n_blocks = pl.cdiv(B, block_b)
    Bp = n_blocks * block_b
    if Bp != B:
        pad = Bp - B
        keys = jnp.pad(keys, ((0, pad), (0, 0), (0, 0)))
        values = jnp.pad(values, ((0, pad), (0, 0), (0, 0)))
        queries = jnp.pad(queries, ((0, pad), (0, 0)))

    # ---- weight prep (done once, outside the grid) ------------------------------
    w1k_t = w1[:, :K].T                 # (K, H)  acts on keys
    w1q_t = w1[:, K:].T                 # (Q, H)  acts on queries
    w2_row = w2.reshape(1, H)           # (1, H)

    # Pre-flatten keys so the kernel does a single folded (BB*T, K) matmul with no
    # in-kernel reshape of the large operand.
    keys2d = keys.reshape(Bp * T, K)

    BB = block_b
    itemsize = jnp.dtype(keys.dtype).itemsize
    cost = pl.CostEstimate(
        flops=2 * Bp * T * K * H + 2 * Bp * Q * H + 3 * Bp * T * H + 2 * Bp * T * V,
        transcendentals=Bp * T * (H + 1),          # tanh + exp
        bytes_accessed=itemsize * (Bp * T * (K + V) + Bp * Q + K * H + Q * H + H + Bp * V),
    )

    out = pl.pallas_call(
        functools.partial(_additive_attn_kernel, num_steps=T),
        out_shape=jax.ShapeDtypeStruct((Bp, V), keys.dtype),
        grid_spec=pltpu.PrefetchScalarGridSpec(
            num_scalar_prefetch=0,
            grid=(n_blocks,),
            in_specs=[
                pl.BlockSpec((BB * T, K), lambda b: (b, 0)),     # keys (flattened)
                pl.BlockSpec((BB, Q), lambda b: (b, 0)),         # queries
                pl.BlockSpec((BB, T, V), lambda b: (b, 0, 0)),   # values
                pl.BlockSpec((K, H), lambda b: (0, 0)),          # w1k^T (grid-invariant)
                pl.BlockSpec((Q, H), lambda b: (0, 0)),          # w1q^T (grid-invariant)
                pl.BlockSpec((1, H), lambda b: (0, 0)),          # w2 row (grid-invariant)
            ],
            out_specs=pl.BlockSpec((BB, V), lambda b: (b, 0)),   # lane-dense 2-D output
        ),
        compiler_params=pltpu.CompilerParams(
            dimension_semantics=("parallel",),    # independent batch tiles (v7x: 2 TCs)
        ),
        cost_estimate=cost,
    )(keys2d, queries, values, w1k_t, w1q_t, w2_row)

    return out[:B]


def _reference(keys, values, queries, w1, w2):
    B, T, K = keys.shape
    q = jnp.broadcast_to(queries[:, None, :], (B, T, queries.shape[-1]))
    kq = jnp.concatenate([keys, q], axis=2)
    hidden = jnp.tanh(kq @ w1.T)
    scores = hidden @ w2.T                     # (B, T, 1)
    scores = jnp.swapaxes(scores, 1, 2)        # (B, 1, T)
    alpha = jax.nn.softmax(scores, axis=-1)    # valid_lens=None
    return (alpha @ values).reshape(B, -1)


if __name__ == "__main__":
    # Small shapes consistent with the module's forward.
    B, T = 2, 8
    key_size, query_size, value_size, num_hidden = 16, 16, 16, 32

    root = jax.random.PRNGKey(0)
    k_keys, k_vals, k_q, k_w1, k_w2 = jax.random.split(root, 5)

    keys = jax.random.normal(k_keys, (B, T, key_size), dtype=jnp.float32)
    values = jax.random.normal(k_vals, (B, T, value_size), dtype=jnp.float32)
    queries = jax.random.normal(k_q, (B, query_size), dtype=jnp.float32)

    # Deterministic parameter init (nn.Linear weight shapes, bias=False).
    w1 = jax.random.normal(k_w1, (num_hidden, key_size + query_size), dtype=jnp.float32) * 0.1
    w2 = jax.random.normal(k_w2, (1, num_hidden), dtype=jnp.float32) * 0.1

    # TODO(synk): valid_lens masking and dropout are identity here (valid_lens=None, drop_pro=0).
    out = additive_attention(keys, values, queries, w1, w2)
    jax.block_until_ready(out)

    ref = _reference(keys, values, queries, w1, w2)
    assert out.shape == (B, value_size)
    # Tolerance accounts for the approx (EUP) reciprocal in the softmax normalizer.
    assert jnp.allclose(out, ref, atol=2e-3, rtol=2e-3), float(jnp.max(jnp.abs(out - ref)))
    print("KERNEL_OK")
</pallas_src>

<mosaic_0001>
module attributes {stable_mosaic.version = 11 : i64} {
  func.func @_additive_attn_kernel(%arg0: i32, %arg1: memref<16x16xf32, #tpu.memory_space<vmem>>, %arg2: memref<2x16xf32, #tpu.memory_space<vmem>>, %arg3: memref<2x8x16xf32, #tpu.memory_space<vmem>>, %arg4: memref<16x32xf32, #tpu.memory_space<vmem>>, %arg5: memref<16x32xf32, #tpu.memory_space<vmem>>, %arg6: memref<1x32xf32, #tpu.memory_space<vmem>>, %arg7: memref<2x16xf32, #tpu.memory_space<vmem>>) attributes {dimension_semantics = [#tpu.dimension_semantics<parallel>], iteration_bounds = array<i64: 1>, scalar_prefetch = 0 : i64, scratch_operands = 0 : i64, tpu.core_type = #tpu.core_type<tc>, window_params = [{transform_indices = @transform_0, window_bounds = array<i64: 16, 16>}, {transform_indices = @transform_1, window_bounds = array<i64: 2, 16>}, {transform_indices = @transform_2, window_bounds = array<i64: 2, 8, 16>}, {pipeline_mode = #tpu.pipeline_mode<synchronous>, transform_indices = @transform_3, window_bounds = array<i64: 16, 32>}, {pipeline_mode = #tpu.pipeline_mode<synchronous>, transform_indices = @transform_4, window_bounds = array<i64: 16, 32>}, {pipeline_mode = #tpu.pipeline_mode<synchronous>, transform_indices = @transform_5, window_bounds = array<i64: 1, 32>}, {transform_indices = @transform_6, window_bounds = array<i64: 2, 16>}]} {
    %c0 = arith.constant 0 : index
    %c0_0 = arith.constant 0 : index
    %0 = vector.load %arg1[%c0, %c0_0] : memref<16x16xf32, #tpu.memory_space<vmem>>, vector<16x16xf32>
    %c0_1 = arith.constant 0 : index
    %c0_2 = arith.constant 0 : index
    %1 = vector.load %arg2[%c0_1, %c0_2] : memref<2x16xf32, #tpu.memory_space<vmem>>, vector<2x16xf32>
    %c0_3 = arith.constant 0 : index
    %c0_4 = arith.constant 0 : index
    %c0_5 = arith.constant 0 : index
    %2 = vector.load %arg3[%c0_3, %c0_4, %c0_5] : memref<2x8x16xf32, #tpu.memory_space<vmem>>, vector<2x8x16xf32>
    %c0_6 = arith.constant 0 : index
    %c0_7 = arith.constant 0 : index
    %3 = vector.load %arg4[%c0_6, %c0_7] : memref<16x32xf32, #tpu.memory_space<vmem>>, vector<16x32xf32>
    %c0_8 = arith.constant 0 : index
    %c0_9 = arith.constant 0 : index
    %4 = vector.load %arg5[%c0_8, %c0_9] : memref<16x32xf32, #tpu.memory_space<vmem>>, vector<16x32xf32>
    %c0_10 = arith.constant 0 : index
    %c0_11 = arith.constant 0 : index
    %5 = vector.load %arg6[%c0_10, %c0_11] : memref<1x32xf32, #tpu.memory_space<vmem>>, vector<1x32xf32>
    %cst = arith.constant dense<0.000000e+00> : vector<16x32xf32>
    %6 = tpu.matmul %0, %3, %cst {dimension_numbers = #tpu.dot_dimension_numbers<[1], [0], [0], [1], [0, 0, 1, 1], [], []>} : vector<16x16xf32>, vector<16x32xf32>, vector<16x32xf32> -> vector<16x32xf32>
    %cst_12 = arith.constant dense<0.000000e+00> : vector<2x32xf32>
    %7 = tpu.matmul %1, %4, %cst_12 {dimension_numbers = #tpu.dot_dimension_numbers<[1], [0], [0], [1], [0, 0, 1, 1], [], []>} : vector<2x16xf32>, vector<16x32xf32>, vector<2x32xf32> -> vector<2x32xf32>
    %8 = vector.shape_cast %6 : vector<16x32xf32> to vector<2x8x32xf32>
    %9 = vector.shape_cast %7 : vector<2x32xf32> to vector<2x1x32xf32>
    %10 = vector.broadcast %9 : vector<2x1x32xf32> to vector<2x8x32xf32>
    %11 = arith.addf %8, %10 : vector<2x8x32xf32>
    %12 = math.tanh %11 : vector<2x8x32xf32>
    %13 = vector.shape_cast %5 : vector<1x32xf32> to vector<1x1x32xf32>
    %14 = vector.broadcast %13 : vector<1x1x32xf32> to vector<2x8x32xf32>
    %15 = arith.mulf %12, %14 : vector<2x8x32xf32>
    %cst_13 = arith.constant dense<0.000000e+00> : vector<2x8xf32>
    %16 = vector.multi_reduction <add>, %15, %cst_13 [2] : vector<2x8x32xf32> to vector<2x8xf32>
    %cst_14 = arith.constant dense<0xFF800000> : vector<2xf32>
    %17 = vector.multi_reduction <maximumf>, %16, %cst_14 [1] : vector<2x8xf32> to vector<2xf32>
    %18 = vector.shape_cast %17 : vector<2xf32> to vector<2x1xf32>
    %19 = vector.broadcast %18 : vector<2x1xf32> to vector<2x8xf32>
    %20 = arith.subf %16, %19 : vector<2x8xf32>
    %21 = math.exp %20 : vector<2x8xf32>
    %cst_15 = arith.constant dense<0.000000e+00> : vector<2xf32>
    %22 = vector.multi_reduction <add>, %21, %cst_15 [1] : vector<2x8xf32> to vector<2xf32>
    %23 = vector.shape_cast %22 : vector<2xf32> to vector<2x1xf32>
    %24 = tpu.reciprocal %23 {approx = true} : vector<2x1xf32> -> vector<2x1xf32>
    %25 = vector.broadcast %24 : vector<2x1xf32> to vector<2x8xf32>
    %26 = arith.mulf %21, %25 : vector<2x8xf32>
    %27 = vector.shape_cast %26 : vector<2x8xf32> to vector<2x8x1xf32>
    %28 = vector.broadcast %27 : vector<2x8x1xf32> to vector<2x8x16xf32>
    %29 = arith.mulf %28, %2 : vector<2x8x16xf32>
    %cst_16 = arith.constant dense<0.000000e+00> : vector<2x16xf32>
    %30 = vector.multi_reduction <add>, %29, %cst_16 [1] : vector<2x8x16xf32> to vector<2x16xf32>
    %c0_17 = arith.constant 0 : index
    %c0_18 = arith.constant 0 : index
    %31 = vector.load %arg7[%c0_17, %c0_18] : memref<2x16xf32, #tpu.memory_space<vmem>>, vector<2x16xf32>
    tpu.vector_store %arg7[%c0_17, %c0_18], %30 {strides = array<i32>} : memref<2x16xf32, #tpu.memory_space<vmem>>, vector<2x16xf32>,
    return
  }
  func.func @transform_0(%arg0: i32) -> (i32, i32) {
    %c0_i32 = arith.constant 0 : i32
    %c0_i32_0 = arith.constant 0 : i32
    return %arg0, %c0_i32 : i32, i32
  }
  func.func @transform_1(%arg0: i32) -> (i32, i32) {
    %c0_i32 = arith.constant 0 : i32
    %c0_i32_0 = arith.constant 0 : i32
    return %arg0, %c0_i32 : i32, i32
  }
  func.func @transform_2(%arg0: i32) -> (i32, i32, i32) {
    %c0_i32 = arith.constant 0 : i32
    %c0_i32_0 = arith.constant 0 : i32
    %c0_i32_1 = arith.constant 0 : i32
    return %arg0, %c0_i32, %c0_i32_0 : i32, i32, i32
  }
  func.func @transform_3(%arg0: i32) -> (i32, i32) {
    %c0_i32 = arith.constant 0 : i32
    %c0_i32_0 = arith.constant 0 : i32
    %c0_i32_1 = arith.constant 0 : i32
    return %c0_i32, %c0_i32_0 : i32, i32
  }
  func.func @transform_4(%arg0: i32) -> (i32, i32) {
    %c0_i32 = arith.constant 0 : i32
    %c0_i32_0 = arith.constant 0 : i32
    %c0_i32_1 = arith.constant 0 : i32
    return %c0_i32, %c0_i32_0 : i32, i32
  }
  func.func @transform_5(%arg0: i32) -> (i32, i32) {
    %c0_i32 = arith.constant 0 : i32
    %c0_i32_0 = arith.constant 0 : i32
    %c0_i32_1 = arith.constant 0 : i32
    return %c0_i32, %c0_i32_0 : i32, i32
  }
  func.func @transform_6(%arg0: i32) -> (i32, i32) {
    %c0_i32 = arith.constant 0 : i32
    %c0_i32_0 = arith.constant 0 : i32
    return %arg0, %c0_i32 : i32, i32
  }
}

</mosaic_0001>

<bundles_post_ra>
// kernel: tpu_custom_call.1
= control target key start
LH: loop header
LB: loop body
LE: loop exit
PB: predicated region body
PF: predicated region fallthrough
CT: control target
= control target key end

     0   :  { %11 = vsyncpa [#allocation3], 0  ;;  %s706_s0 = inlined_call_operand.hbm [shape: f32[16,16], index: 0, kind: input, shape index: {}]   ;;  %s707_s1 = inlined_call_operand.hbm [shape: f32[2,16], index: 1, kind: input, shape index: {}]   ;;  %s708_s2 = inlined_call_operand.hbm [shape: f32[2,8,16], index: 2, kind: input, shape index: {}]   ;;  %s709_s3 = inlined_call_operand.hbm [shape: f32[16,32], index: 3, kind: input, shape index: {}]   ;;  %s710_s4 = inlined_call_operand.hbm [shape: f32[16,32], index: 4, kind: input, shape index: {}]   ;;  %s711_s5 = inlined_call_operand.vmem [shape: f32[1,32], index: 5, kind: input, shape index: {}]   ;;  %s712_s6 = inlined_call_operand.hbm [shape: f32[2,16], index: 6, kind: output, shape index: {}]  }
   0x1   :  { %12 = vsyncpa [#allocation6], 0 }
   0x2   :  { %13 = vsyncpa [#allocation9], 0 }
   0x3   :  { %14 = vsyncpa [#allocation4], 0  ;;  %s604_s21 = smov [#allocation5]  }
   0x4   :  { %s33_s22 = sshll.u32 %s604_s21, 4  ;;  %s34_s22 = int_to_ptr.vmem [resolvable:$true] %s33_s22 }
   0x5   :  { %s484_s23 = scalar_lea.vmem %s34_s22, 32  ;;  %p489_p1 = scmp.lt.s32.totalorder %s34_s22, %s34_s22 }
   0x6   :  { %p485_p0 = scmp.ne.s32.totalorder %s34_s22, %s484_s23  ;;  %p490_p2 = scmp.lt.s32.totalorder %s484_s23, %s484_s23 }
   0x8   :  { %p491_p3 = por %p490_p2, %p489_p1 }
   0xa   :  { %p492_p4 = pnand %p491_p3, %p485_p0 }
   0xc   :  { %495 = shalt.err (!%p492_p4)
}
   0xd   :  { %36 = dma.hbm_to_vmem [thread:$0]  %s707_s1, 32, %s34_s22, [#allocation6]  }
   0xe   :  { %s605_s26 = smov [#allocation8]   ;;  %s606_s28 = smov [#allocation2]  }
   0xf   :  { %s54_s27 = sshll.u32 %s605_s26, 4  ;;  %s20_s29 = sshll.u32 %s606_s28, 4  ;;  %s55_s27 = int_to_ptr.vmem [resolvable:$true] %s54_s27  ;;  %s21_s29 = int_to_ptr.vmem [resolvable:$true] %s20_s29 }
  0x10   :  { %s504_s30 = scalar_lea.vmem %s55_s27, 256  ;;  %p509_p6 = scmp.lt.s32.totalorder %s55_s27, %s55_s27 }
  0x11   :  { %p505_p5 = scmp.ne.s32.totalorder %s55_s27, %s504_s30  ;;  %p510_p7 = scmp.lt.s32.totalorder %s504_s30, %s504_s30 }
  0x13   :  { %p511_p8 = por %p510_p7, %p509_p6 }
  0x15   :  { %p512_p9 = pnand %p511_p8, %p505_p5 }
  0x17   :  { %515 = shalt.err (!%p512_p9)
}
  0x18   :  { %s607_s7 = smov 128   ;;  %s608_s8 = smov 8  }
  0x19   :  { %60 = dma.hbm_to_vmem [thread:$0]  %s709_s3, 256, %s55_s27, [#allocation9], %s607_s7, %s607_s7, %s608_s8  }
  0x1a   :  { %s524_s1 = scalar_lea.vmem %s21_s29, 256  ;;  %p529_p11 = scmp.lt.s32.totalorder %s21_s29, %s21_s29 }
  0x1b   :  { %p525_p10 = scmp.ne.s32.totalorder %s21_s29, %s524_s1  ;;  %p530_p12 = scmp.lt.s32.totalorder %s524_s1, %s524_s1 }
  0x1d   :  { %p531_p13 = por %p530_p12, %p529_p11 }
  0x1f   :  { %p532_p0 = pnand %p531_p13, %p525_p10 }
  0x21   :  { %535 = shalt.err (!%p532_p0)
}
  0x22   :  { %26 = dma.hbm_to_vmem [thread:$0]  %s706_s0, 256, %s21_s29, [#allocation3], %s607_s7, %s607_s7, %s608_s8  }
  0x23   :  { %s609_s13 = smov [#allocation7]   ;;  %s610_s15 = smov [#allocation10]  }
  0x24   :  { %s42_s14 = sshll.u32 %s609_s13, 4  ;;  %s66_s3 = sshll.u32 %s610_s15, 4  ;;  %s43_s14 = int_to_ptr.vmem [resolvable:$true] %s42_s14  ;;  %s67_s3 = int_to_ptr.vmem [resolvable:$true] %s66_s3 }
  0x25   :  { %s544_s16 = scalar_lea.vmem %s43_s14, 256  ;;  %p549_p2 = scmp.lt.s32.totalorder %s43_s14, %s43_s14 }
  0x26   :  { %p545_p1 = scmp.ne.s32.totalorder %s43_s14, %s544_s16  ;;  %p550_p3 = scmp.lt.s32.totalorder %s544_s16, %s544_s16 }
  0x28   :  { %p551_p4 = por %p550_p3, %p549_p2 }
  0x2a   :  { %p552_p5 = pnand %p551_p4, %p545_p1 }
  0x2c   :  { %555 = shalt.err (!%p552_p5)
}
  0x2d   :  { %48 = dma.hbm_to_vmem [thread:$0]  %s708_s2, 256, %s43_s14, [#allocation6], %s607_s7, %s607_s7, %s608_s8  }
  0x2e   :  { %s564_s0 = scalar_lea.vmem %s67_s3, 256  ;;  %p569_p7 = scmp.lt.s32.totalorder %s67_s3, %s67_s3 }
  0x2f   :  { %p565_p6 = scmp.ne.s32.totalorder %s67_s3, %s564_s0  ;;  %p570_p8 = scmp.lt.s32.totalorder %s564_s0, %s564_s0 }
  0x31   :  { %p571_p9 = por %p570_p8, %p569_p7 }
  0x33   :  { %p572_p10 = pnand %p571_p9, %p565_p6 }
  0x35   :  { %575 = shalt.err (!%p572_p10)
}
  0x36   :  { %72 = dma.hbm_to_vmem [thread:$0]  %s710_s4, 256, %s67_s3, [#allocation9], %s607_s7, %s607_s7, %s608_s8  }
  0x37   :  { %596 = dma.done.wait [#allocation3], 256  }
  0x38   :  { %597 = vsyncadd [#allocation3], 4294967040 }
  0x39   :  { %598 = dma.done.wait [#allocation6], 288  }
  0x3a   :  { %599 = vsyncadd [#allocation6], 4294967008 }
  0x3b   :  { %600 = dma.done.wait [#allocation9], 512  }
  0x3c   :  { %601 = vsyncadd [#allocation9], 4294966784  ;;  %v611_v0 = vmov 0.0   ;;  %vm612_vm0 = vmmov 0   ;;  %v98_v1 = vld [vmem:[#allocation10 + $0x8] sm:$0xff]  ;;  %v96_v2 = vld [vmem:[#allocation8 + $0x8] sm:$0xff]  ;;  %v259_v10 = vlaneseq }
  0x3d   :  { %445 = vmatprep.subr.mxu1 %v611_v0  ;;  %449 = vmatprep.mubr.msk.f32.mxu1 %vm612_vm0, %v611_v0  ;;  %v97_v3 = vld [vmem:[#allocation10] sm:$0xff]  ;;  %v95_v4 = vld [vmem:[#allocation8] sm:$0xff]  ;;  %v92_v5 = vld [vmem:[#allocation5] sm:$0x3]  ;;  %vm100_vm1 = vcmask 130048   ;;  %vm300_vm2 = vcmask 261120  }
  0x3e   :  { %446 = vmatpush3.msra.mxu1 %v98_v1  ;;  %438 = vmatprep.subr.mxu0 %v96_v2  ;;  %v90_v6 = vld [vmem:[#allocation2] sm:$0xff]  ;;  %v91_v7 = vld [vmem:[#allocation2 + $0x8] sm:$0xff]  ;;  %v613_v8 = vmov 1966171168   ;;  %v681_v12 = vshrl.u32 %v259_v10, 7  ;;  %v310_v34 = vand.u32 127, %v259_v10 }
  0x3f   :  { %447 = vmatprep.subr.mxu1 %v611_v0  ;;  %439 = vmatpush3.msra.mxu0 %v96_v2  ;;  %v257_v9 = vunpack.c.l.s4 %v613_v8  ;;  %v430_v27 = vld [vmem:[%s711_s5] ss:$0 sm:$0xff]  ;;  %vm319_vm3 = vcmask 1041409   ;;  %vm322_vm4 = vcmask 58368   ;;  %v614_v42 = vmov 0   ;;  %v93_v1 = vld [vmem:[#allocation7] sm:$0xff] }
  0x40   :  { %448 = vmatpush3.msra.mxu1 %v97_v3  ;;  %440 = vmatprep.subr.mxu0 %v95_v4  ;;  %v685_v16 = vsub.s32 0, %v681_v12  ;;  %v313_v36 = vsub.s32 %v310_v34, %v681_v12  ;;  %v333_v43 = vsub.s32 1, %v681_v12  ;;  %s615_s5 = smov [#allocation11]   ;;  %vm408_vm5 = vcmask 123904  }
  0x41   :  { %450 = vmatmul.mubr.msk.f32.vlgmr.msra.gmra.mxu1 %vm100_vm1, %v92_v5  ;;  %441 = vmatpush3.msra.mxu0 %v95_v4  ;;  %v258_v11 = vunpack.c.0.s8 %v257_v9  ;;  %v94_v4 = vld [vmem:[#allocation7 + $0x8] sm:$0xff]  ;;  %s416_s21 = sshll.u32 %s615_s5, 4  ;;  %s417_s21 = int_to_ptr.vmem [resolvable:$true] %s416_s21 }
  0x42   :  { %442 = vmatprep.mubr.msk.f32.mxu0 %vm100_vm1, %v90_v6  ;;  %465 = vset.pattern.permute.xlu0 %v614_v42  ;;  %s576_s22 = scalar_lea.vmem %s417_s21, 32  ;;  %p581_p12 = scmp.lt.s32.totalorder %s417_s21, %s417_s21 }
  0x43   :  { %443 = vmatmul.mubr.msk.f32.vlgmr.msra.gmra.mxu0 %vm100_vm1, %v91_v7  ;;  %v261_v13 = vsub.s32 %v258_v11, %v681_v12  ;;  %464 = vset.pattern.permute.xlu1 %v614_v42  ;;  %p577_p11 = scmp.ne.s32.totalorder %s417_s21, %s576_s22  ;;  %p582_p13 = scmp.lt.s32.totalorder %s576_s22, %s576_s22 }
  0x45   :  { %p583_p0 = por %p582_p13, %p581_p12 }
  0x47   :  { %p584_p1 = pnand %p583_p0, %p577_p11 }
 0x101   :  { %v251_v14 = vpop.f32.mrf.mxu1 }
 0x102   :  { %v262_v15 = vrot.slane %v251_v14, %v261_v13 }
 0x103   :  { %v444_v17 = vpop.f32.mrf.mxu0  ;;  %v451_v18 = vpop.f32.mrf.mxu1 }
 0x104   :  { %v263_v19 = vcombine.high %v262_v15, %v262_v15  ;;  %v270_v20 = vrot.slane %v262_v15, %v261_v13 }
 0x105   :  { %v173_v23 = vpop.f32.mrf.mxu0 }
 0x106   :  { %v277_v21 = vrot.slane %v263_v19, %v261_v13  ;;  %v281_v22 = vrot.slane %v270_v20, %v685_v16 }
 0x108   :  { %v285_v24 = vrot.slane %v277_v21, %v685_v16  ;;  %v288_v25 = vadd.f32 %v281_v22, %v173_v23 }
 0x10a   :  { %v289_v26 = vadd.f32 %v444_v17, %v285_v24  ;;  %466 = vtanh.f32 %v288_v25 }
 0x10c   :  { %468 = vtanh.f32 %v289_v26 }
 0x117   :  { %v467_v28 = vpop.eup %466 }
 0x118   :  { %v298_v29 = vmul.f32 %v467_v28, %v430_v27 }
 0x119   :  { %v469_v30 = vpop.eup %468 }
 0x11a   :  { %v301_v31 = vsel %vm300_vm2, %v298_v29, 0.0  ;;  %v299_v32 = vmul.f32 %v469_v30, %v430_v27 }
 0x11b   :  { %302 = vadd.xlane.f32.xlu0 %v301_v31 }
 0x11c   :  { %v304_v33 = vsel %vm300_vm2, %v299_v32, 0.0 }
 0x11f   :  { %305 = vadd.xlane.f32.xlu0 %v304_v33 }
 0x1a4   :  { %v303_v35 = vpop.xlane.xlu0 %302 }
 0x1a5   :  { %v314_v38 = vrot.slane %v303_v35, %v313_v36 }
 0x1a8   :  { %v306_v37 = vpop.xlane.xlu0 %305 }
 0x1a9   :  { %v318_v39 = vrot.slane %v306_v37, %v313_v36 }
 0x1ab   :  { %v320_v40 = vsel %vm319_vm3, %v318_v39, %v314_v38 }
 0x1ac   :  { %v323_v41 = vsel %vm322_vm4, %v320_v40, -inf }
 0x1ad   :  { %324 = vmax.xlane.f32.xlu1 %v323_v41 }
 0x236   :  { %v325_v44 = vpop.xlane.xlu1 %324 }
 0x237   :  { %v330_v45 = vrot.slane %v325_v44, %v685_v16  ;;  %v334_v46 = vrot.slane %v325_v44, %v333_v43 }
 0x239   :  { %v337_v47 = vsub.f32 %v303_v35, %v330_v45  ;;  %v338_v48 = vsub.f32 %v306_v37, %v334_v46 }
 0x23b   :  { %v339_v49 = vmul.f32 1.442695, %v337_v47  ;;  %v341_v50 = vmul.f32 1.442695, %v338_v48 }
 0x23d   :  { %470 = vpow2.f32 %v339_v49 }
 0x23e   :  { %472 = vpow2.f32 %v341_v50 }
 0x24a   :  { %v471_v51 = vpop.eup %470 }
 0x24b   :  { %v473_v52 = vpop.eup %472  ;;  %346 = vperm.xlu1 %464, %v471_v51  }
 0x24c   :  { %349 = vperm.xlu0 %465, %v473_v52  }
 0x2c6   :  { %v347_v53 = vpop.permute.xlu1 %346 }
 0x2c7   :  { %v350_v54 = vpop.permute.xlu0 %349  ;;  %v354_v55 = vrot.slane %v347_v53, %v313_v36 }
 0x2c8   :  { %v358_v56 = vrot.slane %v350_v54, %v313_v36 }
 0x2ca   :  { %v359_v57 = vsel %vm319_vm3, %v358_v56, %v354_v55 }
 0x2cb   :  { %v361_v58 = vsel %vm322_vm4, %v359_v57, 0.0 }
 0x2cc   :  { %362 = vadd.xlane.f32.xlu1 %v361_v58 }
 0x355   :  { %v363_v59 = vpop.xlane.xlu1 %362 }
 0x356   :  { %474 = vrcp.f32 %v363_v59 }
 0x363   :  { %v475_v60 = vpop.eup %474 }
 0x364   :  { %v369_v61 = vrot.slane %v475_v60, %v685_v16  ;;  %v373_v63 = vrot.slane %v475_v60, %v333_v43 }
 0x366   :  { %v376_v62 = vmul.f32 %v471_v51, %v369_v61  ;;  %v377_v0 = vmul.f32 %v473_v52, %v373_v63 }
 0x368   :  { %380 = vperm.xlu0 %465, %v376_v62  }
 0x36c   :  { %385 = vperm.xlu0 %465, %v377_v0  }
 0x3e3   :  { %v381_v2 = vpop.permute.xlu0 %380 }
 0x3e4   :  { %v388_v3 = vmul.f32 %v381_v2, %v93_v1 }
 0x3e6   :  { %v390_v5 = vsel %vm100_vm1, %v388_v3, 0.0 }
 0x3e7   :  { %v391_v6 = vrot.slane %v390_v5, 4  ;;  %v386_v7 = vpop.permute.xlu0 %385 }
 0x3e8   :  { %v389_v8 = vmul.f32 %v386_v7, %v94_v4 }
 0x3e9   :  { %v392_v9 = vadd.f32 %v391_v6, %v390_v5 }
 0x3ea   :  { %v397_v10 = vsel %vm100_vm1, %v389_v8, 0.0 }
 0x3eb   :  { %v393_v11 = vrot.slane %v392_v9, 2  ;;  %v398_v12 = vrot.slane %v397_v10, 4 }
 0x3ed   :  { %v394_v13 = vadd.f32 %v393_v11, %v392_v9  ;;  %v399_v14 = vadd.f32 %v398_v12, %v397_v10 }
 0x3ef   :  { %v400_v15 = vrot.slane %v399_v14, 2  ;;  %v395_v16 = vrot.slane %v394_v13, 1 }
 0x3f1   :  { %v401_v17 = vadd.f32 %v400_v15, %v399_v14  ;;  %v396_v19 = vadd.f32 %v395_v16, %v394_v13 }
 0x3f3   :  { %v402_v18 = vrot.slane %v401_v17, 1 }
 0x3f5   :  { %v403_v20 = vadd.f32 %v402_v18, %v401_v17 }
 0x3f7   :  { %v406_v21 = vsel %vm319_vm3, %v403_v20, %v396_v19 }
 0x3f8   :  { %409 = vst.msk [vmem:[#allocation11] sm:$0x3] %vm408_vm5, %v406_v21 }
 0x3f9   :  { %587 = shalt.err (!%p584_p1)
}
 0x3fa   :  { %419 = dma.vmem_to_hbm [thread:$0]  %s417_s21, 32, %s712_s6, [#allocation4]  }
 0x3fb   :  { %602 = dma.done.wait [#allocation4], 32  }
 0x3fc   :  { %603 = vsyncadd [#allocation4], 4294967264 }
 0x3fd   :  { %423 = vsyncpa [#allocation3], 1 }
 0x3fe   :  { %424 = vsyncpa [#allocation6], 1 }
 0x3ff   :  { %425 = vsyncpa [#allocation9], 1 }
 0x400   :  { %426 = vsyncpa [#allocation4], 1 }

</bundles_post_ra>
